<compile_context>
chip_gen: v5e
topology: v5e:2x2
jax: 0.10.0
libtpu: 0.0.40
codegen_flags: <defaults>
</compile_context>

<pallas_src>
import functools

import jax
import jax.numpy as jnp
from jax.experimental import pallas as pl
from jax.experimental.pallas import tpu as pltpu

SUBLANE = 8


def _round_up(x, m):
    return ((x + m - 1) // m) * m


def _flatten_rows(x):
    *lead, k = x.shape
    return x.reshape(-1, k), lead


def _row_tile(m, tm_max):
    # Few, big row tiles (per-grid-step overhead ~0.35us dominates otherwise),
    # but guarantee >=2 grid steps when possible so v7x's 2nd TensorCore is
    # used; harmless on v5e/v6e (single TC). Never below one sublane pack.
    half = -(-m // 2)
    return max(SUBLANE, min(tm_max, _round_up(half, SUBLANE)))


# ---------------------------------------------------------------------------
# Kernels
# ---------------------------------------------------------------------------

def _linear_kernel(x_ref, w_ref, b_ref, o_ref, *, compute_dtype):
    # x_ref: (tm, K)   w_ref: (K, N)   b_ref: (1, N)   o_ref: (tm, N)
    x = x_ref[...]
    if compute_dtype is not None:
        x = x.astype(compute_dtype)          # VMEM-local cast, no HBM pass
    acc = jnp.dot(x, w_ref[...], preferred_element_type=jnp.float32)
    o_ref[...] = (acc + b_ref[...]).astype(o_ref.dtype)


def _dual_linear_kernel(xa_ref, xb_ref, wa_ref, wb_ref, ba_ref, bb_ref,
                        oa_ref, ob_ref, *, compute_dtype):
    # Two projections sharing the same rows, one launch, two exact-width
    # outputs (no padded slab, no post-kernel slice).
    xa = xa_ref[...]
    xb = xb_ref[...]
    if compute_dtype is not None:
        xa = xa.astype(compute_dtype)
        xb = xb.astype(compute_dtype)
    oa_ref[...] = (jnp.dot(xa, wa_ref[...], preferred_element_type=jnp.float32)
                   + ba_ref[...]).astype(oa_ref.dtype)
    ob_ref[...] = (jnp.dot(xb, wb_ref[...], preferred_element_type=jnp.float32)
                   + bb_ref[...]).astype(ob_ref.dtype)


# ---------------------------------------------------------------------------
# Wrappers
# ---------------------------------------------------------------------------

def pallas_linear(x, w_kn, b_1n, *, tm_max=2048, compute_dtype=None,
                  out_dtype=None):
    """y = x @ w_kn + b_1n, with w_kn already transposed to (K, N)."""
    x2, lead = _flatten_rows(x)
    M, K = x2.shape
    assert w_kn.shape[0] == K and b_1n.shape == (1, w_kn.shape[1])
    N = w_kn.shape[1]
    odt = x.dtype if out_dtype is None else out_dtype

    tm = _row_tile(M, tm_max)
    grid = (pl.cdiv(M, tm),)
    kernel = functools.partial(_linear_kernel, compute_dtype=compute_dtype)

    out = pl.pallas_call(
        kernel,
        out_shape=jax.ShapeDtypeStruct((M, N), odt),
        grid_spec=pltpu.PrefetchScalarGridSpec(
            num_scalar_prefetch=0,
            grid=grid,
            in_specs=[
                pl.BlockSpec((tm, K), lambda i: (i, 0)),
                pl.BlockSpec((K, N), lambda i: (0, 0)),   # VMEM-resident
                pl.BlockSpec((1, N), lambda i: (0, 0)),   # VMEM-resident
            ],
            out_specs=pl.BlockSpec((tm, N), lambda i: (i, 0)),
        ),
        compiler_params=pltpu.CompilerParams(
            dimension_semantics=("parallel",)),
    )(x2, w_kn, b_1n)
    return out.reshape(*lead, N)


def pallas_dual_linear(xa, xb, wa_kn, wb_kn, ba_1n, bb_1n, *, tm_max=2048,
                       compute_dtype=None, out_dtype=None):
    """Fused: (xa @ wa_kn + ba, xb @ wb_kn + bb) -- one launch, two outputs.

    xa, xb must share leading dims (same rows). Weights are pre-transposed
    (K, N); no lane padding and no post-kernel slicing.
    """
    xa2, lead = _flatten_rows(xa)
    xb2, lead_b = _flatten_rows(xb)
    assert lead == lead_b, "fused heads must share leading dims"
    M, Ka = xa2.shape
    _, Kb = xb2.shape
    assert wa_kn.shape[0] == Ka and wb_kn.shape[0] == Kb
    Na, Nb = wa_kn.shape[1], wb_kn.shape[1]
    assert ba_1n.shape == (1, Na) and bb_1n.shape == (1, Nb)
    odt = xa.dtype if out_dtype is None else out_dtype

    tm = _row_tile(M, tm_max)
    grid = (pl.cdiv(M, tm),)
    kernel = functools.partial(_dual_linear_kernel, compute_dtype=compute_dtype)

    oa, ob = pl.pallas_call(
        kernel,
        out_shape=(jax.ShapeDtypeStruct((M, Na), odt),
                   jax.ShapeDtypeStruct((M, Nb), odt)),
        grid_spec=pltpu.PrefetchScalarGridSpec(
            num_scalar_prefetch=0,
            grid=grid,
            in_specs=[
                pl.BlockSpec((tm, Ka), lambda i: (i, 0)),
                pl.BlockSpec((tm, Kb), lambda i: (i, 0)),
                pl.BlockSpec((Ka, Na), lambda i: (0, 0)),  # VMEM-resident
                pl.BlockSpec((Kb, Nb), lambda i: (0, 0)),  # VMEM-resident
                pl.BlockSpec((1, Na), lambda i: (0, 0)),   # VMEM-resident
                pl.BlockSpec((1, Nb), lambda i: (0, 0)),   # VMEM-resident
            ],
            out_specs=[
                pl.BlockSpec((tm, Na), lambda i: (i, 0)),
                pl.BlockSpec((tm, Nb), lambda i: (i, 0)),
            ],
        ),
        compiler_params=pltpu.CompilerParams(
            dimension_semantics=("parallel",)),
    )(xa2, xb2, wa_kn, wb_kn, ba_1n, bb_1n)
    return oa.reshape(*lead, Na), ob.reshape(*lead, Nb)


# ---------------------------------------------------------------------------
# Model
# ---------------------------------------------------------------------------

class VidCapModelPallas:
    """JAX/Pallas port of the defined portion of VidCapModel.forward."""

    def __init__(self, config, key, compute_dtype=None, out_dtype=None):
        # compute_dtype=jnp.bfloat16: MXU inputs in bf16, f32 accumulation.
        # out_dtype=jnp.bfloat16: halve output HBM traffic (v6e/v7x) when
        # downstream heads tolerate it. Defaults keep exact f32 numerics.
        proj = config["proj_dims"]
        self.config = config
        self._compute_dtype = compute_dtype
        self._out_dtype = out_dtype
        k = jax.random.split(key, 8)

        def init_linear(kw, kb, out_dim, in_dim):
            # Deterministic, nn.Linear-like uniform init (PyTorch layout).
            bound = 1.0 / (in_dim ** 0.5)
            w = jax.random.uniform(kw, (out_dim, in_dim), jnp.float32,
                                   -bound, bound)
            b = jax.random.uniform(kb, (out_dim,), jnp.float32, -bound, bound)
            return w, b

        # Raw params in PyTorch nn.Linear layout (kept for reference checks).
        self.temporal_proj = init_linear(k[0], k[1], proj["out"],
                                         proj["temporal_in"])
        self.object_proj = init_linear(k[2], k[3], proj["out"],
                                       proj["object_in"])
        self.context_proj = init_linear(k[4], k[5], proj["out"],
                                        proj["context_in"])
        # TODO(synk): semantic_mapper is defined but unused in the reference
        # forward(); it presumably feeds the (unavailable) caption head.
        self.semantic_mapper = init_linear(k[6], k[7], config["semantic_dim"],
                                           config["embed_dim"])

        # Pack once at init: pre-transposed (K, N) weights (cast to the
        # compute dtype here, never in the hot path), f32 bias as (1, N).
        def pack(w, b):
            wt = jnp.asarray(w.T)
            if compute_dtype is not None:
                wt = wt.astype(compute_dtype)
            return wt, b.reshape(1, -1).astype(jnp.float32)

        self._ctx_packed = pack(*self.context_proj)
        self._tmp_packed = pack(*self.temporal_proj)
        self._obj_packed = pack(*self.object_proj)

        # One jit over the whole hot path: both pallas_calls live in a single
        # XLA executable (amortized launch / warm pipeline).
        self._jit_forward = jax.jit(self._forward_impl)

    # ---- hot path (jitted) ----
    def _forward_impl(self, temporal_features, object_features,
                      context_features):
        wc, bc = self._ctx_packed
        wt, bt = self._tmp_packed
        # Fused context+temporal heads (same row count B*T): one launch,
        # two exact-width outputs, no post-kernel slicing.
        C_project, M_project = pallas_dual_linear(
            context_features, temporal_features, wc, wt, bc, bt,
            compute_dtype=self._compute_dtype, out_dtype=self._out_dtype)

        wo, bo = self._obj_packed
        object_project = pallas_linear(
            object_features, wo, bo,
            compute_dtype=self._compute_dtype, out_dtype=self._out_dtype)
        return C_project, M_project, object_project

    def forward(self, temporal_features, object_features, context_features,
                caption_tokens, mode="training"):
        if mode not in ("training", "inference"):
            raise ValueError(f"Unsupported mode: {mode}")
        # TODO(synk): object_head / action_head / global_head / caption_head
        # source was not provided; their outputs cannot be reproduced. The
        # projected features (which feed all of them) are returned instead.
        return self._jit_forward(temporal_features, object_features,
                                 context_features)


# ---------------------------------------------------------------------------
# Demo / correctness check
# ---------------------------------------------------------------------------

if __name__ == "__main__":
    config = {
        "proj_dims": {
            "temporal_in": 32,
            "object_in": 48,
            "context_in": 24,
            "out": 64,
        },
        "embed_dim": 64,
        "semantic_dim": 16,
        # Sub-head configs are unused (head source unavailable).
        "object_head_config": {},
        "action_head_config": {},
        "global_head_config": {},
        "decoder_config": {},
    }

    key = jax.random.PRNGKey(0)
    kparam, kt, ko, kc = jax.random.split(key, 4)

    B, T, O, L = 2, 8, 3, 6
    temporal_features = jax.random.normal(
        kt, (B, T, config["proj_dims"]["temporal_in"]), jnp.float32)
    object_features = jax.random.normal(
        ko, (B, T, O, config["proj_dims"]["object_in"]), jnp.float32)
    context_features = jax.random.normal(
        kc, (B, T, config["proj_dims"]["context_in"]), jnp.float32)
    caption_tokens = jnp.zeros((B, L), jnp.int32)

    # Plain-JAX reference of nn.Linear semantics.
    def ref_linear(x, w, b):
        return x @ w.T + b

    # ---- exact f32 path ----
    model = VidCapModelPallas(config, kparam)
    C_proj, M_proj, obj_proj = model.forward(
        temporal_features, object_features, context_features, caption_tokens,
        mode="training")
    jax.block_until_ready((C_proj, M_proj, obj_proj))

    assert C_proj.shape == (B, T, 64)
    assert M_proj.shape == (B, T, 64)
    assert obj_proj.shape == (B, T, O, 64)

    assert jnp.allclose(
        C_proj, ref_linear(context_features, *model.context_proj), atol=1e-5)
    assert jnp.allclose(
        M_proj, ref_linear(temporal_features, *model.temporal_proj), atol=1e-5)
    assert jnp.allclose(
        obj_proj, ref_linear(object_features, *model.object_proj), atol=1e-5)

    # ---- bf16-compute path (loose tolerance; same params, same key) ----
    model_bf16 = VidCapModelPallas(config, kparam,
                                   compute_dtype=jnp.bfloat16)
    C_b, M_b, O_b = model_bf16.forward(
        temporal_features, object_features, context_features, caption_tokens,
        mode="training")
    jax.block_until_ready((C_b, M_b, O_b))
    assert jnp.allclose(C_b, ref_linear(context_features, *model.context_proj),
                        atol=5e-2, rtol=5e-2)
    assert jnp.allclose(M_b, ref_linear(temporal_features, *model.temporal_proj),
                        atol=5e-2, rtol=5e-2)
    assert jnp.allclose(O_b, ref_linear(object_features, *model.object_proj),
                        atol=5e-2, rtol=5e-2)

    print("KERNEL_OK")
</pallas_src>

<mosaic_0001>
module attributes {stable_mosaic.version = 11 : i64} {
  func.func @_linear_kernel(%arg0: i32, %arg1: memref<24x48xf32, #tpu.memory_space<vmem>>, %arg2: memref<48x64xf32, #tpu.memory_space<vmem>>, %arg3: memref<1x64xf32, #tpu.memory_space<vmem>>, %arg4: memref<24x64xf32, #tpu.memory_space<vmem>>) attributes {dimension_semantics = [#tpu.dimension_semantics<parallel>], iteration_bounds = array<i64: 2>, scalar_prefetch = 0 : i64, scratch_operands = 0 : i64, tpu.core_type = #tpu.core_type<tc>, window_params = [{transform_indices = @transform_0, window_bounds = array<i64: 24, 48>}, {pipeline_mode = #tpu.pipeline_mode<synchronous>, transform_indices = @transform_1, window_bounds = array<i64: 48, 64>}, {pipeline_mode = #tpu.pipeline_mode<synchronous>, transform_indices = @transform_2, window_bounds = array<i64: 1, 64>}, {transform_indices = @transform_3, window_bounds = array<i64: 24, 64>}]} {
    %c0 = arith.constant 0 : index
    %c0_0 = arith.constant 0 : index
    %0 = vector.load %arg1[%c0, %c0_0] : memref<24x48xf32, #tpu.memory_space<vmem>>, vector<24x48xf32>
    %c0_1 = arith.constant 0 : index
    %c0_2 = arith.constant 0 : index
    %1 = vector.load %arg2[%c0_1, %c0_2] : memref<48x64xf32, #tpu.memory_space<vmem>>, vector<48x64xf32>
    %cst = arith.constant dense<0.000000e+00> : vector<24x64xf32>
    %2 = tpu.matmul %0, %1, %cst {dimension_numbers = #tpu.dot_dimension_numbers<[1], [0], [0], [1], [0, 0, 1, 1], [], []>} : vector<24x48xf32>, vector<48x64xf32>, vector<24x64xf32> -> vector<24x64xf32>
    %c0_3 = arith.constant 0 : index
    %c0_4 = arith.constant 0 : index
    %3 = vector.load %arg3[%c0_3, %c0_4] : memref<1x64xf32, #tpu.memory_space<vmem>>, vector<1x64xf32>
    %4 = vector.broadcast %3 : vector<1x64xf32> to vector<24x64xf32>
    %5 = arith.addf %2, %4 : vector<24x64xf32>
    %c0_5 = arith.constant 0 : index
    %c0_6 = arith.constant 0 : index
    %6 = vector.load %arg4[%c0_5, %c0_6] : memref<24x64xf32, #tpu.memory_space<vmem>>, vector<24x64xf32>
    tpu.vector_store %arg4[%c0_5, %c0_6], %5 {strides = array<i32>} : memref<24x64xf32, #tpu.memory_space<vmem>>, vector<24x64xf32>,
    return
  }
  func.func @transform_0(%arg0: i32) -> (i32, i32) {
    %c0_i32 = arith.constant 0 : i32
    %c0_i32_0 = arith.constant 0 : i32
    return %arg0, %c0_i32 : i32, i32
  }
  func.func @transform_1(%arg0: i32) -> (i32, i32) {
    %c0_i32 = arith.constant 0 : i32
    %c0_i32_0 = arith.constant 0 : i32
    %c0_i32_1 = arith.constant 0 : i32
    return %c0_i32, %c0_i32_0 : i32, i32
  }
  func.func @transform_2(%arg0: i32) -> (i32, i32) {
    %c0_i32 = arith.constant 0 : i32
    %c0_i32_0 = arith.constant 0 : i32
    %c0_i32_1 = arith.constant 0 : i32
    return %c0_i32, %c0_i32_0 : i32, i32
  }
  func.func @transform_3(%arg0: i32) -> (i32, i32) {
    %c0_i32 = arith.constant 0 : i32
    %c0_i32_0 = arith.constant 0 : i32
    return %arg0, %c0_i32 : i32, i32
  }
}

module attributes {stable_mosaic.version = 11 : i64} {
  func.func @_dual_linear_kernel(%arg0: i32, %arg1: memref<8x24xf32, #tpu.memory_space<vmem>>, %arg2: memref<8x32xf32, #tpu.memory_space<vmem>>, %arg3: memref<24x64xf32, #tpu.memory_space<vmem>>, %arg4: memref<32x64xf32, #tpu.memory_space<vmem>>, %arg5: memref<1x64xf32, #tpu.memory_space<vmem>>, %arg6: memref<1x64xf32, #tpu.memory_space<vmem>>, %arg7: memref<8x64xf32, #tpu.memory_space<vmem>>, %arg8: memref<8x64xf32, #tpu.memory_space<vmem>>) attributes {dimension_semantics = [#tpu.dimension_semantics<parallel>], iteration_bounds = array<i64: 2>, scalar_prefetch = 0 : i64, scratch_operands = 0 : i64, tpu.core_type = #tpu.core_type<tc>, window_params = [{transform_indices = @transform_0, window_bounds = array<i64: 8, 24>}, {transform_indices = @transform_1, window_bounds = array<i64: 8, 32>}, {pipeline_mode = #tpu.pipeline_mode<synchronous>, transform_indices = @transform_2, window_bounds = array<i64: 24, 64>}, {pipeline_mode = #tpu.pipeline_mode<synchronous>, transform_indices = @transform_3, window_bounds = array<i64: 32, 64>}, {pipeline_mode = #tpu.pipeline_mode<synchronous>, transform_indices = @transform_4, window_bounds = array<i64: 1, 64>}, {pipeline_mode = #tpu.pipeline_mode<synchronous>, transform_indices = @transform_5, window_bounds = array<i64: 1, 64>}, {transform_indices = @transform_6, window_bounds = array<i64: 8, 64>}, {transform_indices = @transform_7, window_bounds = array<i64: 8, 64>}]} {
    %c0 = arith.constant 0 : index
    %c0_0 = arith.constant 0 : index
    %0 = vector.load %arg1[%c0, %c0_0] : memref<8x24xf32, #tpu.memory_space<vmem>>, vector<8x24xf32>
    %c0_1 = arith.constant 0 : index
    %c0_2 = arith.constant 0 : index
    %1 = vector.load %arg2[%c0_1, %c0_2] : memref<8x32xf32, #tpu.memory_space<vmem>>, vector<8x32xf32>
    %c0_3 = arith.constant 0 : index
    %c0_4 = arith.constant 0 : index
    %2 = vector.load %arg3[%c0_3, %c0_4] : memref<24x64xf32, #tpu.memory_space<vmem>>, vector<24x64xf32>
    %cst = arith.constant dense<0.000000e+00> : vector<8x64xf32>
    %3 = tpu.matmul %0, %2, %cst {dimension_numbers = #tpu.dot_dimension_numbers<[1], [0], [0], [1], [0, 0, 1, 1], [], []>} : vector<8x24xf32>, vector<24x64xf32>, vector<8x64xf32> -> vector<8x64xf32>
    %c0_5 = arith.constant 0 : index
    %c0_6 = arith.constant 0 : index
    %4 = vector.load %arg5[%c0_5, %c0_6] : memref<1x64xf32, #tpu.memory_space<vmem>>, vector<1x64xf32>
    %5 = vector.broadcast %4 : vector<1x64xf32> to vector<8x64xf32>
    %6 = arith.addf %3, %5 : vector<8x64xf32>
    %c0_7 = arith.constant 0 : index
    %c0_8 = arith.constant 0 : index
    %7 = vector.load %arg7[%c0_7, %c0_8] : memref<8x64xf32, #tpu.memory_space<vmem>>, vector<8x64xf32>
    tpu.vector_store %arg7[%c0_7, %c0_8], %6 {strides = array<i32>} : memref<8x64xf32, #tpu.memory_space<vmem>>, vector<8x64xf32>,
    %c0_9 = arith.constant 0 : index
    %c0_10 = arith.constant 0 : index
    %8 = vector.load %arg4[%c0_9, %c0_10] : memref<32x64xf32, #tpu.memory_space<vmem>>, vector<32x64xf32>
    %cst_11 = arith.constant dense<0.000000e+00> : vector<8x64xf32>
    %9 = tpu.matmul %1, %8, %cst_11 {dimension_numbers = #tpu.dot_dimension_numbers<[1], [0], [0], [1], [0, 0, 1, 1], [], []>} : vector<8x32xf32>, vector<32x64xf32>, vector<8x64xf32> -> vector<8x64xf32>
    %c0_12 = arith.constant 0 : index
    %c0_13 = arith.constant 0 : index
    %10 = vector.load %arg6[%c0_12, %c0_13] : memref<1x64xf32, #tpu.memory_space<vmem>>, vector<1x64xf32>
    %11 = vector.broadcast %10 : vector<1x64xf32> to vector<8x64xf32>
    %12 = arith.addf %9, %11 : vector<8x64xf32>
    %c0_14 = arith.constant 0 : index
    %c0_15 = arith.constant 0 : index
    %13 = vector.load %arg8[%c0_14, %c0_15] : memref<8x64xf32, #tpu.memory_space<vmem>>, vector<8x64xf32>
    tpu.vector_store %arg8[%c0_14, %c0_15], %12 {strides = array<i32>} : memref<8x64xf32, #tpu.memory_space<vmem>>, vector<8x64xf32>,
    return
  }
  func.func @transform_0(%arg0: i32) -> (i32, i32) {
    %c0_i32 = arith.constant 0 : i32
    %c0_i32_0 = arith.constant 0 : i32
    return %arg0, %c0_i32 : i32, i32
  }
  func.func @transform_1(%arg0: i32) -> (i32, i32) {
    %c0_i32 = arith.constant 0 : i32
    %c0_i32_0 = arith.constant 0 : i32
    return %arg0, %c0_i32 : i32, i32
  }
  func.func @transform_2(%arg0: i32) -> (i32, i32) {
    %c0_i32 = arith.constant 0 : i32
    %c0_i32_0 = arith.constant 0 : i32
    %c0_i32_1 = arith.constant 0 : i32
    return %c0_i32, %c0_i32_0 : i32, i32
  }
  func.func @transform_3(%arg0: i32) -> (i32, i32) {
    %c0_i32 = arith.constant 0 : i32
    %c0_i32_0 = arith.constant 0 : i32
    %c0_i32_1 = arith.constant 0 : i32
    return %c0_i32, %c0_i32_0 : i32, i32
  }
  func.func @transform_4(%arg0: i32) -> (i32, i32) {
    %c0_i32 = arith.constant 0 : i32
    %c0_i32_0 = arith.constant 0 : i32
    %c0_i32_1 = arith.constant 0 : i32
    return %c0_i32, %c0_i32_0 : i32, i32
  }
  func.func @transform_5(%arg0: i32) -> (i32, i32) {
    %c0_i32 = arith.constant 0 : i32
    %c0_i32_0 = arith.constant 0 : i32
    %c0_i32_1 = arith.constant 0 : i32
    return %c0_i32, %c0_i32_0 : i32, i32
  }
  func.func @transform_6(%arg0: i32) -> (i32, i32) {
    %c0_i32 = arith.constant 0 : i32
    %c0_i32_0 = arith.constant 0 : i32
    return %arg0, %c0_i32 : i32, i32
  }
  func.func @transform_7(%arg0: i32) -> (i32, i32) {
    %c0_i32 = arith.constant 0 : i32
    %c0_i32_0 = arith.constant 0 : i32
    return %arg0, %c0_i32 : i32, i32
  }
}

</mosaic_0001>

<bundles_post_ra>
// kernel: _forward_impl.2
= control target key start
LH: loop header
LB: loop body
LE: loop exit
PB: predicated region body
PF: predicated region fallthrough
CT: control target
= control target key end

     0   :  { %s1224_s0 = inlined_call_operand.hbm [shape: f32[16,24], index: 0, kind: input, shape index: {}]   ;;  %s1225_s1 = inlined_call_operand.hbm [shape: f32[16,32], index: 1, kind: input, shape index: {}]   ;;  %s1226_s2 = inlined_call_operand.hbm [shape: f32[24,64], index: 2, kind: input, shape index: {}]   ;;  %s1227_s3 = inlined_call_operand.hbm [shape: f32[32,64], index: 3, kind: input, shape index: {}]   ;;  %s1228_s4 = inlined_call_operand.vmem [shape: f32[1,64], index: 4, kind: input, shape index: {}]   ;;  %s1229_s5 = inlined_call_operand.vmem [shape: f32[1,64], index: 5, kind: input, shape index: {}]   ;;  %s1230_s6 = inlined_call_operand.hbm [shape: f32[16,64], index: 6, kind: output, shape index: {0}]   ;;  %s1231_s7 = inlined_call_operand.hbm [shape: f32[16,64], index: 7, kind: output, shape index: {1}]  }
   0x1   :  { %1236 = sst [smem:[#allocation23_spill]] %s1226_s2 }
   0x2   :  { %1237 = sst [smem:[#allocation24_spill]] %s1227_s3 }
   0x3   :  { %13 = vsyncpa [#allocation3], 0 }
   0x4   :  { %15 = vsyncpa [#allocation3 + $0x1], 0 }
   0x5   :  { %16 = vsyncpa [#allocation6], 0 }
   0x6   :  { %18 = vsyncpa [#allocation6 + $0x1], 0 }
   0x7   :  { %19 = vsyncpa [#allocation9], 0 }
   0x8   :  { %20 = vsyncpa [#allocation4], 0 }
   0x9   :  { %22 = vsyncpa [#allocation4 + $0x1], 0 }
   0xa   :  { %23 = vsyncpa [#allocation12], 0 }
   0xb   :  { %25 = vsyncpa [#allocation12 + $0x1], 0  ;;  %s1008_s24 = smov 0   ;;  %s1010_s25 = smov 0  }
   0xc   :  { %s1012_s26 = smov 0   ;;  %s1014_s27 = smov 0  }
   0xd LB: > { %1238 = sst [smem:[#allocation19_spill]] %s958_s26  ;;  %s1032_s8 = sadd.s32 4294967295, %s962_s27   ;;  %s962_s27 = sphi %s1014_s27, %s1252_s27   ;;  %s958_s26 = sphi %s1012_s26, %s1254_s26   ;;  %s954_s25 = sphi %s1010_s25, %s1256_s25   ;;  %s950_s24 = sphi %s1008_s24, %s1255_s24  }
   0xe   : > { %1239 = sst [smem:[#allocation20_spill]] %s962_s27  ;;  %p628_p0 = scmp.ge.s32.totalorder %s962_s27, 1 }
   0xf   : > { %s1240_s2 = sld [smem:[#allocation23_spill]]  ;;  %p52_p1 = scmp.eq.s32.totalorder %s1032_s8, 0 }
  0x10   : > { %p224_p2 = scmp.lt.s32.totalorder %s962_s27, 3  ;;  %s964_s10 = smov [#allocation7]  }
  0x11   : > { %s237_s11 = sshll.u32 %s964_s10, 4  ;;  %s1242_s3 = sld [smem:[#allocation24_spill]]  ;;  %s238_s11 = int_to_ptr.vmem [resolvable:$true] %s237_s11 }
  0x12   : > { %p1037_p3 = pnand %p628_p0, %p224_p2  ;;  %s965_s15 = smov [#allocation8]  }
  0x13   : > { %s251_s16 = sshll.u32 %s965_s15, 4  ;;  %s966_s17 = smov 128   ;;  %s252_s16 = int_to_ptr.vmem [resolvable:$true] %s251_s16 }
  0x14   : > { %p667_p4 = pneg %p1037_p3  ;;  %s967_s18 = smov 8  }
  0x15   : > { %s235_s30 = sshll.u32 %s1240_s2, 4  ;;  %s627_s19 = sadd.s32 4294967294, %s962_s27   ;;  %s236_s30 = int_to_ptr.hbm [resolvable:$true] %s235_s30 }
  0x16   : > { %p668_p6 = pnand %p667_p4, %p52_p1  ;;  %s1051_s20 = sadd.s32 1, %s962_s27  }
  0x17   : > { %s249_s14 = sshll.u32 %s1242_s3, 4  ;;  %1243 = sst [smem:[#allocation21_spill]] %s1051_s20  ;;  %s250_s14 = int_to_ptr.hbm [resolvable:$true] %s249_s14 }
  0x18   : > { %670 = dma.hbm_to_vmem [thread:$0]  (!%p668_p6), %s236_s30, 384, %s238_s11, [#allocation6], %s966_s17, %s966_s17, %s967_s18  }
  0x19   : > { %673 = dma.hbm_to_vmem [thread:$0]  (!%p668_p6), %s250_s14, 512, %s252_s16, [#allocation9], %s966_s17, %s966_s17, %s967_s18  }
  0x1a   : > { %s35_s21 = ssub.s32 %s962_s27, %s1051_s20  ;;  %s38_s22 = sadd.s32 1, %s958_s26 }
  0x1b   : > { %p36_p7 = scmp.eq.s32.totalorder %s35_s21, 0  ;;  %p45_p8 = scmp.ne.s32.totalorder %s958_s26, %s954_s25 }
  0x1c   : > { %p46_p9 = scmp.eq.s32.totalorder %s962_s27, 0  ;;  %p51_p10 = scmp.ne.s32.totalorder %s954_s25, %s950_s24 }
  0x1d   : > { %s1062_s23 = scalar_select %p36_p7, %s958_s26, %s38_s22  }
  0x1e   : > { %p1064_p11 = por %p46_p9, %p45_p8  ;;  %p1070_p12 = por %p52_p1, %p51_p10 }
  0x1f   : > { %1244 = sst [smem:[#allocation22_spill]] %s1062_s23  ;;  %p185_p13 = scmp.eq.s32.totalorder %s1032_s8, 1 }
  0x20   : > { %p191_p0 = scmp.eq.s32.totalorder %s627_s19, 1  ;;  %p690_p2 = scmp.lt.s32.totalorder %s962_s27, 2 }
  0x21   : > { %s271_s30 = sand.u32 1, %s958_s26   ;;  %p1077_p4 = por %p185_p13, %p45_p8 }
  0x22   : > { %p1081_p6 = por %p191_p0, %p51_p10  ;;  %s1085_s12 = sshll.u32 %s271_s30, 3 }
  0x23   : > { %s633_s13 = sshll.u32 %s962_s27, 3  ;;  %s275_s17 = scalar_lea.vmem [#allocation2], %s1085_s12 }
  0x24   : > { %s279_s16 = scalar_lea.hbm %s1224_s0, %s633_s13  ;;  %s283_s18 = sshll.u32 %s275_s17, 4  ;;  %s284_s18 = int_to_ptr.vmem [resolvable:$true] %s283_s18 }
  0x25   : > { %s281_s19 = sshll.u32 %s279_s16, 4  ;;  %p1094_p7 = pnand %p690_p2, %p1064_p11  ;;  %s282_s19 = int_to_ptr.hbm [resolvable:$true] %s281_s19 }
  0x26   : > { %s298_s3 = scalar_lea.hbm %s1225_s1, %s633_s13  ;;  %s290_s23 = sand.u32 1, %s962_s27  }
  0x27   : > { %s272_s26 = scalar_lea.sflag [#allocation3], %s271_s30  ;;  %s792_s14 = sshra.s32 %s282_s19, 4  ;;  %s793_s14 = int_to_ptr.hbm [resolvable:$true] %s792_s14 }
  0x28   : > { %s794_s15 = scalar_lea.hbm %s793_s14, 8  ;;  %p796_p9 = pneg %p1094_p7 }
  0x29   : > { %p795_p8 = scmp.ne.s32.totalorder %s793_s14, %s794_s15  ;;  %s799_s17 = scalar_lea.hbm %s1224_s0, 16 }
  0x2a   : > { %p800_p13 = scmp.lt.s32.totalorder %s793_s14, %s1224_s0  ;;  %p801_p0 = scmp.lt.s32.totalorder %s799_s17, %s794_s15 }
  0x2b   : > { %p797_p10 = pnand %p796_p9, %p795_p8 }
  0x2c   : > { %p802_p2 = por %p801_p0, %p800_p13 }
  0x2d   : > { %p798_p11 = pneg %p797_p10 }
  0x2f   : > { %p803_p5 = pnand %p802_p2, %p798_p11 }
  0x31   : > { %806 = shalt.err (!%p803_p5)
}
  0x32   : > { %677 = dma.hbm_to_vmem [thread:$0]  (!%p1094_p7), %s282_s19, 128, %s284_s18, %s272_s26  }
  0x33   : > { %s300_s30 = sshll.u32 %s298_s3, 4  ;;  %s294_s13 = scalar_lea.vmem [#allocation5], %s1085_s12  ;;  %s301_s30 = int_to_ptr.hbm [resolvable:$true] %s300_s30 }
  0x34   : > { %s302_s20 = sshll.u32 %s294_s13, 4  ;;  %s291_s28 = scalar_lea.sflag [#allocation6], %s290_s23  ;;  %s303_s20 = int_to_ptr.vmem [resolvable:$true] %s302_s20 }
  0x35   : > { %s822_s16 = sshra.s32 %s301_s30, 4  ;;  %s829_s17 = scalar_lea.hbm %s1225_s1, 16  ;;  %s823_s16 = int_to_ptr.hbm [resolvable:$true] %s822_s16 }
  0x36   : > { %s824_s27 = scalar_lea.hbm %s823_s16, 8  ;;  %p830_p5 = scmp.lt.s32.totalorder %s823_s16, %s1225_s1 }
  0x37   : > { %p825_p8 = scmp.ne.s32.totalorder %s823_s16, %s824_s27  ;;  %p831_p13 = scmp.lt.s32.totalorder %s829_s17, %s824_s27 }
  0x39   : > { %p827_p10 = pnand %p825_p8, %p796_p9  ;;  %p832_p0 = por %p831_p13, %p830_p5 }
  0x3b   : > { %p828_p11 = pneg %p827_p10 }
  0x3d   : > { %p833_p2 = pnand %p832_p0, %p828_p11 }
  0x3f   : > { %836 = shalt.err (!%p833_p2)
}
  0x40   : > { %680 = dma.hbm_to_vmem [thread:$0]  (!%p1094_p7), %s301_s30, 128, %s303_s20, %s291_s28  }
  0x41   : > { %311 = sbr.rel (%p1037_p3) target bundleno = 228 (0xe4), region = 44  ;;  %s1130_s3 = sand.u32 (!%p1037_p3), 1, %s954_s25  }
  0x42   : > { %s1133_s23 = sshll.u32 (!%p1037_p3), %s1130_s3, 3  ;;  %s314_s12 = scalar_lea.sflag (!%p1037_p3), [#allocation3], %s1130_s3 }
  0x43   : > { %s317_s27 = scalar_lea.vmem (!%p1037_p3), [#allocation2], %s1133_s23 }
  0x46   : > { %925 = dma.done.wait (%p1070_p12), %s314_s12, 128  }
  0x47   : > { %927 = vsyncadd (%p1070_p12), %s314_s12, 4294967168  ;;  %s323_s9 = sand.u32 1, %s1032_s8   ;;  %s327_s18 = scalar_lea.vmem [#allocation5], %s1133_s23 }
  0x48   : > { %s324_s20 = scalar_lea.sflag [#allocation6], %s323_s9 }
  0x49   : > { %929 = dma.done.wait (%p1070_p12), %s324_s20, 128  }
  0x4a   : > { %931 = vsyncadd (%p1070_p12), %s324_s20, 4294967168 }
  0x4b   : > { %933 = dma.done.wait (%p52_p1), [#allocation6], 384  }
  0x4c   : > { %935 = vsyncadd (%p52_p1), [#allocation6], 4294966912 }
  0x4d   : > { %937 = dma.done.wait (%p52_p1), [#allocation9], 512  }
  0x4e   : > { %939 = vsyncadd (%p52_p1), [#allocation9], 4294966784  ;;  %v417_v0 = vld [vmem:[#allocation8 + $0x18] sm:$0xff]  ;;  %v416_v2 = vld [vmem:[#allocation8 + $0x10] sm:$0xff]  ;;  %vm388_vm0 = vcmask 195584   ;;  %vm422_vm1 = vcmask 261120  }
  0x4f   : > { %v383_v1 = vld [vmem:[#allocation7 + $0x10] sm:$0xff]  ;;  %438 = vmatpush.msra.mxu1 %v417_v0  ;;  %v382_v3 = vld [vmem:[#allocation7 + $0x8] sm:$0xff]  ;;  %v415_v4 = vld [vmem:[#allocation8 + $0x8] sm:$0xff]  ;;  %s647_s29 = sshll.u32 %s1032_s8, 3  ;;  %s371_s15 = scalar_lea.vmem [#allocation10], %s1133_s23  ;;  %vm412_vm2 = vcmask 523264  }
  0x50   : > { %405 = vmatpush.msra.mxu0 %v383_v1  ;;  %v381_v5 = vld [vmem:[#allocation7] sm:$0xff]  ;;  %v414_v7 = vld [vmem:[#allocation8] sm:$0xff]  ;;  %s463_s22 = scalar_lea.hbm %s1230_s6, %s647_s29  ;;  %s477_s14 = scalar_lea.hbm %s1231_s7, %s647_s29 }
  0x51   : > { %439 = vmatpush.msra.mxu1 %v416_v2  ;;  %v379_v6 = vld [vmem:[%s317_s27] sm:$0xff]  ;;  %v380_v8 = vld [vmem:[%s327_s18] sm:$0xff]  ;;  %s1166_s17 = sshll.u32 %s371_s15, 4  ;;  %s467_s2 = sshll.u32 %s463_s22, 4  ;;  %s466_s17 = int_to_ptr.vmem [resolvable:$true] %s1166_s17  ;;  %s468_s2 = int_to_ptr.hbm [resolvable:$true] %s467_s2 }
  0x52   : > { %406 = vmatpush.msra.mxu0 %v382_v3  ;;  %v730_v9 = vld [vmem:[%s1228_s4] ss:$0 sm:$0xff]  ;;  %s378_s12 = scalar_lea.vmem [#allocation11], %s1133_s23  ;;  %s481_s9 = sshll.u32 %s477_s14, 4  ;;  %s1177_s9 = int_to_ptr.hbm [resolvable:$true] %s481_s9 }
  0x53   : > { %440 = vmatpush.msra.mxu1 %v415_v4  ;;  %v731_v10 = vld [vmem:[%s1229_s5] ss:$0 sm:$0xff]  ;;  %s1172_s27 = sshll.u32 %s378_s12, 4  ;;  %s448_s20 = scalar_lea.sflag [#allocation4], %s1130_s3  ;;  %s480_s27 = int_to_ptr.vmem [resolvable:$true] %s1172_s27 }
  0x54   : > { %407 = vmatpush.msra.mxu0 %v381_v5  ;;  %s866_s18 = sshra.s32 %s468_s2, 4  ;;  %s872_s21 = scalar_lea.hbm %s1230_s6, 16  ;;  %s867_s18 = int_to_ptr.hbm [resolvable:$true] %s866_s18 }
  0x55   : > { %643 = vmatmul.msk.f32.vlgmr.msra.gmra.mxu0 %vm388_vm0, %v379_v6  ;;  %441 = vmatpush.msra.mxu1 %v414_v7  ;;  %s868_s29 = scalar_lea.hbm %s867_s18, 8  ;;  %p873_p7 = scmp.lt.s32.totalorder %s867_s18, %s1230_s6 }
  0x56   : > { %644 = vmatmul.msk.f32.vlgmr.msra.gmra.mxu1 %vm422_vm1, %v380_v8  ;;  %p869_p1 = scmp.ne.s32.totalorder %s867_s18, %s868_s29  ;;  %p874_p9 = scmp.lt.s32.totalorder %s872_s21, %s868_s29 }
  0x58   : > { %p870_p3 = pnand %p869_p1, %p1077_p4  ;;  %p875_p8 = por %p874_p9, %p873_p7 }
  0x5a   : > { %p871_p12 = pneg %p870_p3 }
  0x5c   : > { %p876_p10 = pnand %p875_p8, %p871_p12 }
  0xd2   : > { %v409_v11 = vpop.f32.mrf.mxu0 }
  0xd3   : > { %v410_v12 = vadd.f32 %v730_v9, %v409_v11  ;;  %v443_v13 = vpop.f32.mrf.mxu1 }
  0xd4   : > { %v444_v14 = vadd.f32 %v731_v10, %v443_v13 }
  0xd5   : > { %413 = vst.msk [vmem:[%s371_s15] sm:$0xff] %vm412_vm2, %v410_v12 }
  0xd6   : > { %879 = shalt.err (!%p876_p10)
}
  0xd7   : > { %663 = dma.vmem_to_hbm [thread:$0]  (%p1077_p4), %s466_s17, 128, %s468_s2, %s448_s20   ;;  %446 = vst.msk [vmem:[%s378_s12] sm:$0xff] %vm412_vm2, %v444_v14 }
  0xd8   : > { %s453_s13 = scalar_lea.sflag [#allocation12], %s1130_s3  ;;  %s894_s28 = sshra.s32 %s1177_s9, 4  ;;  %s895_s28 = int_to_ptr.hbm [resolvable:$true] %s894_s28 }
  0xd9   : > { %s896_s16 = scalar_lea.hbm %s895_s28, 8  ;;  %s900_s26 = scalar_lea.hbm %s1231_s7, 16 }
  0xda   : > { %p897_p11 = scmp.ne.s32.totalorder %s895_s28, %s896_s16  ;;  %p901_p0 = scmp.lt.s32.totalorder %s895_s28, %s1231_s7 }
  0xdb   : > { %p902_p2 = scmp.lt.s32.totalorder %s900_s26, %s896_s16 }
  0xdc   : > { %p898_p5 = pnand %p897_p11, %p1077_p4 }
  0xdd   : > { %p903_p1 = por %p902_p2, %p901_p0 }
  0xde   : > { %p899_p13 = pneg %p898_p5 }
  0xe0   : > { %p904_p3 = pnand %p903_p1, %p899_p13 }
  0xe2   : > { %907 = shalt.err (!%p904_p3)
}
  0xe3   : > { %664 = dma.vmem_to_hbm [thread:$0]  (%p1077_p4), %s480_s27, 128, %s1177_s9, %s453_s13  }
  0xe4 PF: > { %s1250_s3 = sld [smem:[#allocation20_spill]]  ;;  %s493_s17 = sand.u32 1, %s950_s24  }
  0xe5   : > { %s494_s2 = scalar_lea.sflag [#allocation4], %s493_s17 }
  0xea   : > { %p1251_p12 = scmp.ge.s32.totalorder %s1250_s3, 2 }
  0xec   : > { %p682_p7 = pnand %p1251_p12, %p1081_p6 }
  0xee   : > { %p683_p9 = pneg %p682_p7 }
  0xf0   : > { %941 = dma.done.wait (%p683_p9), %s494_s2, 128  }
  0xf1   : > { %943 = vsyncadd (%p683_p9), %s494_s2, 4294967168  ;;  %s504_s12 = scalar_lea.sflag [#allocation12], %s493_s17 }
  0xf2   : > { %945 = dma.done.wait (%p683_p9), %s504_s12, 128  }
  0xf3   : > { %947 = vsyncadd (%p683_p9), %s504_s12, 4294967168  ;;  %s1252_s27 = sld [smem:[#allocation21_spill]]  ;;  %s1255_s24 = smov %s954_s25 }
  0xf4   : > { %s1253_s10 = sld [smem:[#allocation19_spill]] }
  0xf5   : > { %s1254_s26 = sld [smem:[#allocation22_spill]] }
  0xf9   : > { %p28_p4 = scmp.ge.s32.totalorder %s1252_s27, 4  }
  0xfa   : > { %s1256_s25 = smov %s1253_s10 }
  0xfb   :  { %30 = sbr.rel (!%p28_p4) target bundleno = 13 (0xd), region = 127 }
 0x100   :  { %510 = vsyncpa [#allocation3], 1 }
 0x101   :  { %512 = vsyncpa [#allocation3 + $0x1], 1 }
 0x102   :  { %513 = vsyncpa [#allocation6], 1 }
 0x103   :  { %515 = vsyncpa [#allocation6 + $0x1], 1 }
 0x104   :  { %516 = vsyncpa [#allocation9], 1 }
 0x105   :  { %517 = vsyncpa [#allocation4], 1 }
 0x106   :  { %519 = vsyncpa [#allocation4 + $0x1], 1 }
 0x107   :  { %520 = vsyncpa [#allocation12], 1 }
 0x108   :  { %522 = vsyncpa [#allocation12 + $0x1], 1 }

// kernel: _forward_impl.3
= control target key start
LH: loop header
LB: loop body
LE: loop exit
PB: predicated region body
PF: predicated region fallthrough
CT: control target
= control target key end

     0   :  { %s344_s12 = smov 0   ;;  %s382_s0 = inlined_call_operand.vmem [shape: f32[48,48], index: 0, kind: input, shape index: {}]   ;;  %s383_s1 = inlined_call_operand.vmem [shape: f32[48,64], index: 1, kind: input, shape index: {}]   ;;  %s384_s2 = inlined_call_operand.vmem [shape: f32[1,64], index: 2, kind: input, shape index: {}]   ;;  %s385_s3 = inlined_call_operand.vmem [shape: f32[48,64], index: 3, kind: output, shape index: {}]  }
   0x1 LB: > { %s283_s13 = sadd.s32 4294967295, %s322_s12   ;;  %p287_p0 = scmp.ge.s32.totalorder %s322_s12, 1  ;;  %s322_s12 = sphi %s344_s12, %s13_s12  }
   0x2   : > { %p138_p1 = scmp.lt.s32.totalorder %s322_s12, 3 }
   0x4   : > { %p139_p2 = pnand %p287_p0, %p138_p1 }
   0x5   : > { %s162_s18 = smul.u32 (!%p139_p2), 3, %s283_s13 }
   0x6   : > { %142 = sbr.rel (%p139_p2) target bundleno = 158 (0x9e), region = 32 }
   0x7   : > { %p163_p3 = scmp.lt.s32.totalorder (!%p139_p2), %s162_s18, 5 }
   0xb   : > { %v182_v0 = vld [vmem:[%s383_s1 + $0x28] sm:$0xff]  ;;  %v181_v1 = vld [vmem:[%s383_s1 + $0x20] sm:$0xff]  ;;  %v180_v2 = vld [vmem:[%s383_s1 + $0x18] sm:$0xff]  ;;  %s387_s18 = smov (!%p163_p3, %s162_s18), 5  ;;  %vm187_vm0 = vcmask 392192   ;;  %vm223_vm1 = vcmask 523264  }
   0xc   : > { %296 = vmatpush.msra.mxu2 %v182_v0  ;;  %207 = vmatpush.msra.mxu0 %v182_v0  ;;  %v179_v3 = vld [vmem:[%s383_s1 + $0x10] sm:$0xff]  ;;  %v178_v4 = vld [vmem:[%s383_s1 + $0x8] sm:$0xff]  ;;  %s288_s25 = sshll.u32 %s387_s18, 3  ;;  %v177_v5 = vld [vmem:[%s383_s1] sm:$0xff] }
   0xd   : > { %295 = vmatpush.msra.mxu1 %v182_v0  ;;  %s166_s28 = scalar_lea.vmem %s382_s0, %s288_s25  ;;  %v315_v9 = vld [vmem:[%s384_s2] ss:$0 sm:$0xff]  ;;  %s172_s8 = scalar_lea.vmem %s385_s3, %s288_s25 }
   0xe   : > { %298 = vmatpush.msra.mxu2 %v181_v1  ;;  %208 = vmatpush.msra.mxu0 %v181_v1  ;;  %v176_v6 = vld [vmem:[%s166_s28 + $0x10] sm:$0xff]  ;;  %v174_v7 = vld [vmem:[%s166_s28] sm:$0xff]  ;;  %v175_v8 = vld [vmem:[%s166_s28 + $0x8] sm:$0xff] }
   0xf   : > { %297 = vmatpush.msra.mxu1 %v181_v1 }
  0x10   : > { %300 = vmatpush.msra.mxu2 %v180_v2  ;;  %209 = vmatpush.msra.mxu0 %v180_v2 }
  0x11   : > { %299 = vmatpush.msra.mxu1 %v180_v2 }
  0x12   : > { %302 = vmatpush.msra.mxu2 %v179_v3  ;;  %210 = vmatpush.msra.mxu0 %v179_v3 }
  0x13   : > { %301 = vmatpush.msra.mxu1 %v179_v3 }
  0x14   : > { %304 = vmatpush.msra.mxu2 %v178_v4  ;;  %211 = vmatpush.msra.mxu0 %v178_v4 }
  0x15   : > { %303 = vmatpush.msra.mxu1 %v178_v4 }
  0x16   : > { %306 = vmatpush.msra.mxu2 %v177_v5  ;;  %212 = vmatpush.msra.mxu0 %v177_v5 }
  0x17   : > { %292 = vmatmul.msk.f32.vlgmr.msra.gmra.mxu2 %vm187_vm0, %v176_v6  ;;  %305 = vmatpush.msra.mxu1 %v177_v5 }
  0x18   : > { %290 = vmatmul.msk.f32.vlgmr.msra.gmra.mxu0 %vm187_vm0, %v174_v7  ;;  %291 = vmatmul.msk.f32.vlgmr.msra.gmra.mxu1 %vm187_vm0, %v175_v8 }
  0x95   : > { %v214_v10 = vpop.f32.mrf.mxu0  ;;  %v217_v11 = vpop.f32.mrf.mxu1 }
  0x96   : > { %v215_v12 = vadd.f32 %v315_v9, %v214_v10  ;;  %v218_v13 = vadd.f32 %v315_v9, %v217_v11 }
  0x98   : > { %224 = vst.msk [vmem:[%s172_s8] sm:$0xff] %vm223_vm1, %v215_v12 }
  0x99   : > { %225 = vst.msk [vmem:[%s172_s8 + $0x8] sm:$0xff] %vm223_vm1, %v218_v13 }
  0x9a   : > { %v220_v14 = vpop.f32.mrf.mxu2 }
  0x9b   : > { %v221_v15 = vadd.f32 %v315_v9, %v220_v14 }
  0x9d   : > { %226 = vst.msk [vmem:[%s172_s8 + $0x10] sm:$0xff] %vm223_vm1, %v221_v15 }
  0x9e PF: > { %s13_s12 = sadd.s32 1, %s322_s12  }
  0x9f   : > { %p10_p4 = scmp.ge.s32.totalorder %s13_s12, 4  }
  0xa1   :  { %12 = sbr.rel (!%p10_p4) target bundleno = 1 (0x1), region = 62 }

</bundles_post_ra>
